<compile_context>
chip_gen: v7x
topology: tpu7x:2x2x1
jax: 0.10.0
libtpu: 0.0.40
codegen_flags: <defaults>
</compile_context>

<pallas_src>
import math

import jax
import jax.numpy as jnp
from jax import lax
from jax.experimental import pallas as pl
from jax.experimental.pallas import tpu as pltpu

MASK_FILL = -1000000000.0   # matches torch.tensor(-1e9) in the reference module


# ---------------------------------------------------------------------------
# helpers
# ---------------------------------------------------------------------------
def _round_up(x, m):
    return (x + m - 1) // m * m


def _vmem_capacity_bytes():
    """Physical VMEM of the current chip; conservative fallback if unknown."""
    try:
        fn = getattr(pltpu, "get_tpu_info", None)
        if fn is not None:
            info = fn()
            for attr in ("vmem_capacity_bytes", "vmem_bytes", "vmem_size_bytes"):
                v = getattr(info, attr, None)
                if v:
                    return int(v)
    except Exception:
        pass
    return 64 << 20     # v7x-class per-TC VMEM; safe lower bound for all gens


def _compiler_params(dim_sems, live_block_bytes, scratch_bytes):
    """CompilerParams with an explicit VMEM budget derived from the actual
    block footprint (x2 for double-buffering) plus headroom, capped below
    the physical capacity of the chip generation we are running on."""
    cap = _vmem_capacity_bytes()
    need = 2 * int(live_block_bytes) + int(scratch_bytes) + (8 << 20)
    limit = min(max(need, 32 << 20), int(cap * 0.85))
    limit = max(limit, 16 << 20)
    return pltpu.CompilerParams(dimension_semantics=dim_sems,
                                vmem_limit_bytes=int(limit))


# ---------------------------------------------------------------------------
# Kernel 1: grouped / fused linear   out[g] = x[g or 0] @ W[g] + b[g]
# ---------------------------------------------------------------------------
def _grouped_linear_kernel(x_ref, w_ref, b_ref, o_ref, acc_ref):
    @pl.when(pl.program_id(3) == 0)
    def _zero():
        acc_ref[...] = jnp.zeros_like(acc_ref)

    acc_ref[...] += jnp.dot(x_ref[...], w_ref[...],
                            preferred_element_type=jnp.float32)

    @pl.when(pl.program_id(3) == pl.num_programs(3) - 1)
    def _store():
        o_ref[...] = (acc_ref[...] + b_ref[...].astype(jnp.float32)
                      ).astype(o_ref.dtype)


def grouped_linear(x3, w3, b3, *, tm_max=256, tn_max=512, tk_max=1024):
    """x3: [Gx, M, K] (Gx in {1, G}; Gx==1 => activation shared across groups),
    w3: [G, K, N], b3: [G, 1, N]  ->  [G, M, N]."""
    gx, m, k = x3.shape
    g, k2, n = w3.shape
    assert k2 == k and gx in (1, g)

    tm = min(tm_max, _round_up(m, 8))
    tn = min(tn_max, _round_up(n, 128))
    tk = min(tk_max, _round_up(k, 128))
    mp, np_, kp = _round_up(m, tm), _round_up(n, tn), _round_up(k, tk)

    if mp > m or kp > k:
        x3 = jnp.pad(x3, ((0, 0), (0, mp - m), (0, kp - k)))
    if kp > k or np_ > n:
        w3 = jnp.pad(w3, ((0, 0), (0, kp - k), (0, np_ - n)))
    if np_ > n:
        b3 = jnp.pad(b3, ((0, 0), (0, 0), (0, np_ - n)))

    if gx == g:
        x_idx = lambda gi, i, j, kk: (gi, i, kk)
    else:
        x_idx = lambda gi, i, j, kk: (0, i, kk)

    itemsize = jnp.dtype(x3.dtype).itemsize
    live = (tm * tk + tk * tn + tn + tm * tn) * itemsize
    scratch = tm * tn * 4

    out = pl.pallas_call(
        _grouped_linear_kernel,
        out_shape=jax.ShapeDtypeStruct((g, mp, np_), x3.dtype),
        grid=(g, mp // tm, np_ // tn, kp // tk),
        in_specs=[
            pl.BlockSpec((None, tm, tk), x_idx),
            pl.BlockSpec((None, tk, tn), lambda gi, i, j, kk: (gi, kk, j)),
            pl.BlockSpec((None, 1, tn), lambda gi, i, j, kk: (gi, 0, j)),
        ],
        out_specs=pl.BlockSpec((None, tm, tn), lambda gi, i, j, kk: (gi, i, j)),
        scratch_shapes=[pltpu.VMEM((tm, tn), jnp.float32)],
        compiler_params=_compiler_params(
            ("parallel", "parallel", "parallel", "arbitrary"), live, scratch),
    )(x3, w3, b3)

    if mp > m or np_ > n:
        out = out[:, :m, :n]
    return out


# ---------------------------------------------------------------------------
# Kernel 2a: attention with heads as a grid axis (d_k % 128 == 0)
# ---------------------------------------------------------------------------
def _make_per_head_attention_kernel(has_bias):
    def kernel(*refs):
        if has_bias:
            q_ref, k_ref, v_ref, b_ref, o_ref, m_sc, l_sc, acc_sc = refs
        else:
            q_ref, k_ref, v_ref, o_ref, m_sc, l_sc, acc_sc = refs

        ki = pl.program_id(3)

        @pl.when(ki == 0)
        def _init():
            m_sc[...] = jnp.full_like(m_sc, -jnp.inf)
            l_sc[...] = jnp.zeros_like(l_sc)
            acc_sc[...] = jnp.zeros_like(acc_sc)

        # scale already folded into Q projection weights
        s = lax.dot_general(q_ref[...], k_ref[...], (((1,), (1,)), ((), ())),
                            preferred_element_type=jnp.float32)
        if has_bias:
            s = s + b_ref[...]          # single additive bias (mask + padding)

        m_prev = m_sc[...]
        m_new = jnp.maximum(m_prev, jnp.max(s, axis=-1, keepdims=True))
        alpha = jnp.exp(m_prev - m_new)
        p = jnp.exp(s - m_new)
        l_sc[...] = alpha * l_sc[...] + jnp.sum(p, axis=-1, keepdims=True)
        acc_sc[...] = alpha * acc_sc[...] + jnp.dot(
            p.astype(v_ref.dtype), v_ref[...], preferred_element_type=jnp.float32)
        m_sc[...] = m_new

        @pl.when(ki == pl.num_programs(3) - 1)
        def _finalize():
            inv = pl.reciprocal(l_sc[...], approx=False)   # exact, f32 parity
            o_ref[...] = (acc_sc[...] * inv).astype(o_ref.dtype)

    return kernel


# ---------------------------------------------------------------------------
# Kernel 2b: attention with all heads per grid step (small d_k < 128)
# ---------------------------------------------------------------------------
def _make_looped_attention_kernel(h, d_k, has_bias):
    def kernel(*refs):
        if has_bias:
            q_ref, k_ref, v_ref, b_ref, o_ref, m_sc, l_sc, acc_sc = refs
        else:
            q_ref, k_ref, v_ref, o_ref, m_sc, l_sc, acc_sc = refs

        ki = pl.program_id(2)

        @pl.when(ki == 0)
        def _init():
            m_sc[...] = jnp.full_like(m_sc, -jnp.inf)
            l_sc[...] = jnp.zeros_like(l_sc)
            acc_sc[...] = jnp.zeros_like(acc_sc)

        q = q_ref[...]
        k = k_ref[...]
        v = v_ref[...]
        bias = b_ref[...] if has_bias else None   # hoisted: one load per step

        # Small d_k: [tq, tk] temporaries are tiny, static unroll is cheap.
        for hi in range(h):
            cols = slice(hi * d_k, (hi + 1) * d_k)
            s = lax.dot_general(q[:, cols], k[:, cols], (((1,), (1,)), ((), ())),
                                preferred_element_type=jnp.float32)
            if has_bias:
                s = s + bias

            m_prev = m_sc[hi]
            m_new = jnp.maximum(m_prev, jnp.max(s, axis=-1, keepdims=True))
            alpha = jnp.exp(m_prev - m_new)
            p = jnp.exp(s - m_new)
            l_sc[hi] = alpha * l_sc[hi] + jnp.sum(p, axis=-1, keepdims=True)
            acc_sc[hi] = alpha * acc_sc[hi] + jnp.dot(
                p.astype(v.dtype), v[:, cols], preferred_element_type=jnp.float32)
            m_sc[hi] = m_new

        @pl.when(ki == pl.num_programs(2) - 1)
        def _finalize():
            parts = [acc_sc[hi] * pl.reciprocal(l_sc[hi], approx=False)
                     for hi in range(h)]
            # one lane-dense [tq, d_model] store
            o_ref[...] = jnp.concatenate(parts, axis=-1).astype(o_ref.dtype)

    return kernel


# ---------------------------------------------------------------------------
# Attention driver: tiling, padding, mask->bias, BlockSpecs, pallas_call
# ---------------------------------------------------------------------------
def pallas_attention(q_arr, kv_arr, gq, gk, gv, mask, h):
    """q_arr: [Gq, B, Lq, D]; kv_arr: [Gkv, B, Lk, D]; gq/gk/gv select the
    projection group of Q / K / V inside those arrays (no wrapper transposes)."""
    _, b, lq, d = q_arr.shape
    _, bk, lk, dk2 = kv_arr.shape
    assert bk == b and dk2 == d and d % h == 0
    d_k = d // h
    per_head = (d_k % 128 == 0)          # heads as a grid axis on real shapes
    itemsize = jnp.dtype(q_arr.dtype).itemsize
    cap = _vmem_capacity_bytes()

    # generation-aware tile preferences
    if cap >= (100 << 20):               # 128 MiB class (v5e / v6e)
        tq_pref, tk_pref = 512, 512
    elif cap >= (48 << 20):              # 64 MiB class (v7x per TC)
        tq_pref, tk_pref = 256, 256
    else:
        tq_pref, tk_pref = 128, 256

    def _choose(length, pref):
        if length <= pref:
            return _round_up(length, 8)  # single (padded) tile, never full-seq blowup
        return (pref // 8) * 8

    tq = _choose(lq, tq_pref)
    tk = _choose(lk, tk_pref)

    qw = d_k if per_head else d          # Q / output block width
    kw = d_k if per_head else d          # K / V block width

    def _footprint(tq_, tk_):
        live = (2 * tq_ * qw + 2 * tk_ * kw) * itemsize + tq_ * tk_ * 4
        if per_head:
            scr = (tq_ * d_k + 2 * tq_ * 128) * 4
        else:
            scr = (tq_ * d + 2 * h * tq_ * 128) * 4
        return live, scr

    budget = int(cap * 0.6)
    live, scr = _footprint(tq, tk)
    while 2 * live + scr > budget and tk > 128:
        tk = max(128, tk // 2)
        live, scr = _footprint(tq, tk)
    while 2 * live + scr > budget and tq > 64:
        tq = max(64, tq // 2)
        live, scr = _footprint(tq, tk)

    lq_p = _round_up(lq, tq)
    lk_p = _round_up(lk, tk)
    pad_q, pad_k = lq_p - lq, lk_p - lk
    if pad_q:
        q_arr = jnp.pad(q_arr, ((0, 0), (0, 0), (0, pad_q), (0, 0)))
    if pad_k:
        kv_arr = jnp.pad(kv_arr, ((0, 0), (0, 0), (0, pad_k), (0, 0)))

    # ---- mask / padding as a single f32 additive bias ----------------------
    has_bias = (mask is not None) or (pad_k > 0)
    bias = None
    nb, mq = 1, 1
    if has_bias:
        if mask is not None:
            m = jnp.asarray(mask)
            if m.ndim == 2:                       # [B, Lk] -> [B, 1, Lk]
                m = m[:, None, :]
            nb, mq = m.shape[0], m.shape[1]
            assert m.shape[-1] == lk and nb in (1, b)
            if mq not in (1, lq):
                raise ValueError("mask query dim must be 1 or Lq")
            # masked_fill(mask=mask, value=-1e9): fill where mask is nonzero
            bias = jnp.where(m != 0, MASK_FILL, 0.0).astype(jnp.float32)
        else:
            bias = jnp.zeros((1, 1, lk), jnp.float32)
        pad_bq = pad_q if mq > 1 else 0
        bias = jnp.pad(bias, ((0, 0), (0, pad_bq), (0, pad_k)),
                       constant_values=MASK_FILL)  # padded keys masked out
        b_qblk = tq if mq > 1 else 1

    # ---- specs / grid -------------------------------------------------------
    if per_head:
        grid = (b, h, lq_p // tq, lk_p // tk)
        dim_sems = ("parallel", "parallel", "parallel", "arbitrary")
        q_spec = pl.BlockSpec((None, None, tq, d_k),
                              lambda bi, hi, qi, ki: (gq, bi, qi, hi))
        k_spec = pl.BlockSpec((None, None, tk, d_k),
                              lambda bi, hi, qi, ki: (gk, bi, ki, hi))
        v_spec = pl.BlockSpec((None, None, tk, d_k),
                              lambda bi, hi, qi, ki: (gv, bi, ki, hi))
        out_spec = pl.BlockSpec((None, tq, d_k),
                                lambda bi, hi, qi, ki: (bi, qi, hi))
        scratch = [pltpu.VMEM((tq, 1), jnp.float32),
                   pltpu.VMEM((tq, 1), jnp.float32),
                   pltpu.VMEM((tq, d_k), jnp.float32)]
        kernel = _make_per_head_attention_kernel(has_bias)
        if has_bias:
            bias_spec = pl.BlockSpec(
                (None, b_qblk, tk),
                lambda bi, hi, qi, ki: (bi if nb > 1 else 0,
                                        qi if mq > 1 else 0, ki))
    else:
        grid = (b, lq_p // tq, lk_p // tk)
        dim_sems = ("parallel", "parallel", "arbitrary")
        q_spec = pl.BlockSpec((None, None, tq, d),
                              lambda bi, qi, ki: (gq, bi, qi, 0))
        k_spec = pl.BlockSpec((None, None, tk, d),
                              lambda bi, qi, ki: (gk, bi, ki, 0))
        v_spec = pl.BlockSpec((None, None, tk, d),
                              lambda bi, qi, ki: (gv, bi, ki, 0))
        out_spec = pl.BlockSpec((None, tq, d), lambda bi, qi, ki: (bi, qi, 0))
        scratch = [pltpu.VMEM((h, tq, 1), jnp.float32),
                   pltpu.VMEM((h, tq, 1), jnp.float32),
                   pltpu.VMEM((h, tq, d_k), jnp.float32)]
        kernel = _make_looped_attention_kernel(h, d_k, has_bias)
        if has_bias:
            bias_spec = pl.BlockSpec(
                (None, b_qblk, tk),
                lambda bi, qi, ki: (bi if nb > 1 else 0,
                                    qi if mq > 1 else 0, ki))

    in_specs = [q_spec, k_spec, v_spec]
    args = [q_arr, kv_arr, kv_arr]
    if has_bias:
        in_specs.append(bias_spec)
        args.append(bias)

    out = pl.pallas_call(
        kernel,
        out_shape=jax.ShapeDtypeStruct((b, lq_p, d), q_arr.dtype),
        grid=grid,
        in_specs=in_specs,
        out_specs=out_spec,
        scratch_shapes=scratch,
        compiler_params=_compiler_params(dim_sems, live, scr),
    )(*args)

    if pad_q:
        out = out[:, :lq, :]
    return out


# ---------------------------------------------------------------------------
# Module wrapper (semantics of MultiHeadedAttention.forward, eval mode)
# ---------------------------------------------------------------------------
def multi_headed_attention_forward(params, query, key, value, mask=None, *, h):
    wq, bq, wk, bk, wv, bv, wo, bo = params
    b, lq, d = query.shape
    lk = key.shape[1]
    assert d % h == 0 and value.shape == key.shape
    d_k = d // h
    scale = 1.0 / math.sqrt(d_k)

    # nn.Linear stores weight as [d_out, d_in]; pre-transpose once and fold
    # the attention scale 1/sqrt(d_k) into the Q projection (free at runtime).
    wq_t = wq.T * scale
    bq_s = bq * scale
    wk_t, wv_t, wo_t = wk.T, wv.T, wo.T

    if (query is key) and (key is value):
        # Self-attention: fused QKV projection, activations read from HBM once.
        w3 = jnp.stack([wq_t, wk_t, wv_t])                 # [3, D, D]
        b3 = jnp.stack([bq_s, bk, bv])[:, None, :]         # [3, 1, D]
        qkv = grouped_linear(query.reshape(1, b * lq, d), w3, b3)
        qkv = qkv.reshape(3, b, lq, d)
        q_arr, kv_arr = qkv, qkv
        gq, gk, gv = 0, 1, 2
    else:
        q_arr = grouped_linear(query.reshape(1, b * lq, d),
                               wq_t[None], bq_s[None, None, :]
                               ).reshape(1, b, lq, d)
        gq = 0
        wkv = jnp.stack([wk_t, wv_t])
        bkv = jnp.stack([bk, bv])[:, None, :]
        if key is value:
            kv = grouped_linear(key.reshape(1, b * lk, d), wkv, bkv)
        else:
            kv_x = jnp.stack([key.reshape(b * lk, d), value.reshape(b * lk, d)])
            kv = grouped_linear(kv_x, wkv, bkv)
        kv_arr = kv.reshape(2, b, lk, d)
        gk, gv = 0, 1

    ctx = pallas_attention(q_arr, kv_arr, gq, gk, gv, mask, h)   # [B, Lq, D]

    out = grouped_linear(ctx.reshape(1, b * lq, d), wo_t[None], bo[None, None, :])
    return out.reshape(b, lq, d)


# ---------------------------------------------------------------------------
# Pure-JAX reference (for verification)
# ---------------------------------------------------------------------------
def reference_forward(params, query, key, value, mask=None, *, h):
    wq, bq, wk, bk, wv, bv, wo, bo = params
    b, lq, d = query.shape
    lk = key.shape[1]
    d_k = d // h

    def lin(x, w, bb):
        return x @ w.T + bb

    q = lin(query, wq, bq).reshape(b, lq, h, d_k).transpose(0, 2, 1, 3)
    k = lin(key, wk, bk).reshape(b, lk, h, d_k).transpose(0, 2, 1, 3)
    v = lin(value, wv, bv).reshape(b, lk, h, d_k).transpose(0, 2, 1, 3)

    scores = jnp.einsum("bhqd,bhkd->bhqk", q, k) / math.sqrt(d_k)
    if mask is not None:
        m = jnp.asarray(mask)
        if m.ndim == 2:
            m = m[:, None, :]
        scores = jnp.where(m[:, None].astype(bool), MASK_FILL, scores)
    p = jax.nn.softmax(scores, axis=-1)
    ctx = jnp.einsum("bhqk,bhkd->bhqd", p, v)
    ctx = ctx.transpose(0, 2, 1, 3).reshape(b, lq, d)
    return lin(ctx, wo, bo)


def init_params(key, d_model):
    keys = jax.random.split(key, 8)
    bound = 1.0 / math.sqrt(d_model)
    params = []
    for i in range(4):
        w = jax.random.uniform(keys[2 * i], (d_model, d_model),
                               minval=-bound, maxval=bound, dtype=jnp.float32)
        bb = jax.random.uniform(keys[2 * i + 1], (d_model,),
                                minval=-bound, maxval=bound, dtype=jnp.float32)
        params += [w, bb]
    return tuple(params)


if __name__ == "__main__":
    B, L, D_MODEL, H = 2, 8, 32, 4

    root = jax.random.PRNGKey(0)
    k_param, k_x, k_mem, k_p2, k_x2 = jax.random.split(root, 5)
    params = init_params(k_param, D_MODEL)
    x = jax.random.normal(k_x, (B, L, D_MODEL), dtype=jnp.float32)

    # 1) fused self-attention, no mask (small-d_k looped-head kernel)
    out = jax.block_until_ready(
        multi_headed_attention_forward(params, x, x, x, mask=None, h=H))
    ref = reference_forward(params, x, x, x, mask=None, h=H)
    assert out.shape == (B, L, D_MODEL)
    assert jnp.allclose(out, ref, atol=1e-4, rtol=1e-4), "no-mask mismatch"

    # 2) encoder-style padding mask [B, 1, L] (True == fill with -1e9)
    pad_mask = jnp.zeros((B, 1, L), dtype=jnp.bool_).at[:, :, -2:].set(True)
    out_m = jax.block_until_ready(
        multi_headed_attention_forward(params, x, x, x, mask=pad_mask, h=H))
    ref_m = reference_forward(params, x, x, x, mask=pad_mask, h=H)
    assert jnp.allclose(out_m, ref_m, atol=1e-4, rtol=1e-4), "pad-mask mismatch"

    # 3) decoder-style [B, L, L] mask (mask future positions)
    causal2d = jnp.arange(L)[None, :] > jnp.arange(L)[:, None]
    causal = jnp.broadcast_to(causal2d, (B, L, L))
    out_c = jax.block_until_ready(
        multi_headed_attention_forward(params, x, x, x, mask=causal, h=H))
    ref_c = reference_forward(params, x, x, x, mask=causal, h=H)
    assert jnp.allclose(out_c, ref_c, atol=1e-4, rtol=1e-4), "causal mismatch"

    # 4) cross-attention: query from x, key/value from a longer memory
    mem = jax.random.normal(k_mem, (B, 2 * L, D_MODEL), dtype=jnp.float32)
    out_x = jax.block_until_ready(
        multi_headed_attention_forward(params, x, mem, mem, mask=None, h=H))
    ref_x = reference_forward(params, x, mem, mem, mask=None, h=H)
    assert jnp.allclose(out_x, ref_x, atol=1e-4, rtol=1e-4), "cross mismatch"

    # 5) d_k == 128 path: heads promoted to a grid axis (per-head kernel)
    D2, H2 = 256, 2
    params2 = init_params(k_p2, D2)
    x2 = jax.random.normal(k_x2, (B, L, D2), dtype=jnp.float32)
    causal_b = jnp.broadcast_to(causal2d, (B, L, L))
    out_h = jax.block_until_ready(
        multi_headed_attention_forward(params2, x2, x2, x2, mask=causal_b, h=H2))
    ref_h = reference_forward(params2, x2, x2, x2, mask=causal_b, h=H2)
    assert jnp.allclose(out_h, ref_h, atol=1e-4, rtol=1e-4), "per-head mismatch"

    print("KERNEL_OK")
</pallas_src>

<mosaic_0001>
module attributes {stable_mosaic.version = 11 : i64} {
  func.func @_grouped_linear_kernel(%arg0: i32, %arg1: i32, %arg2: i32, %arg3: i32, %arg4: memref<1x16x128xf32, #tpu.memory_space<vmem>>, %arg5: memref<1x128x128xf32, #tpu.memory_space<vmem>>, %arg6: memref<1x1x128xf32, #tpu.memory_space<vmem>>, %arg7: memref<1x16x128xf32, #tpu.memory_space<vmem>>, %arg8: memref<16x128xf32, #tpu.memory_space<vmem>>) attributes {dimension_semantics = [#tpu.dimension_semantics<parallel>, #tpu.dimension_semantics<parallel>, #tpu.dimension_semantics<parallel>, #tpu.dimension_semantics<arbitrary>], iteration_bounds = array<i64: 3, 1, 1, 1>, scalar_prefetch = 0 : i64, scratch_operands = 1 : i64, tpu.core_type = #tpu.core_type<tc>, window_params = [{transform_indices = @transform_0, window_bounds = array<i64: 1, 16, 128>}, {transform_indices = @transform_1, window_bounds = array<i64: 1, 128, 128>}, {transform_indices = @transform_2, window_bounds = array<i64: 1, 1, 128>}, {transform_indices = @transform_3, window_bounds = array<i64: 1, 16, 128>}]} {
    %c0_i32 = arith.constant 0 : i32
    %0 = arith.cmpi eq, %arg3, %c0_i32 : i32
    %1 = arith.extui %0 : i1 to i32
    %c0_i32_0 = arith.constant 0 : i32
    %2 = arith.cmpi ne, %1, %c0_i32_0 : i32
    scf.if %2 {
      %cst_12 = arith.constant 0.000000e+00 : f32
      %14 = vector.broadcast %cst_12 : f32 to vector<16x128xf32>
      %c0_13 = arith.constant 0 : index
      %c0_14 = arith.constant 0 : index
      %15 = vector.load %arg8[%c0_13, %c0_14] : memref<16x128xf32, #tpu.memory_space<vmem>>, vector<16x128xf32>
      tpu.vector_store %arg8[%c0_13, %c0_14], %14 {strides = array<i32>} : memref<16x128xf32, #tpu.memory_space<vmem>>, vector<16x128xf32>,
    } else {
    }
    %c0 = arith.constant 0 : index
    %c0_1 = arith.constant 0 : index
    %3 = vector.load %arg8[%c0, %c0_1] : memref<16x128xf32, #tpu.memory_space<vmem>>, vector<16x128xf32>
    %c0_2 = arith.constant 0 : index
    %c0_3 = arith.constant 0 : index
    %c0_4 = arith.constant 0 : index
    %4 = vector.load %arg4[%c0_2, %c0_3, %c0_4] : memref<1x16x128xf32, #tpu.memory_space<vmem>>, vector<1x16x128xf32>
    %5 = vector.shape_cast %4 : vector<1x16x128xf32> to vector<16x128xf32>
    %c0_5 = arith.constant 0 : index
    %c0_6 = arith.constant 0 : index
    %c0_7 = arith.constant 0 : index
    %6 = vector.load %arg5[%c0_5, %c0_6, %c0_7] : memref<1x128x128xf32, #tpu.memory_space<vmem>>, vector<1x128x128xf32>
    %7 = vector.shape_cast %6 : vector<1x128x128xf32> to vector<128x128xf32>
    %cst = arith.constant dense<0.000000e+00> : vector<16x128xf32>
    %8 = tpu.matmul %5, %7, %cst {dimension_numbers = #tpu.dot_dimension_numbers<[1], [0], [0], [1], [0, 0, 1, 1], [], []>} : vector<16x128xf32>, vector<128x128xf32>, vector<16x128xf32> -> vector<16x128xf32>
    %9 = arith.addf %3, %8 : vector<16x128xf32>
    %c0_8 = arith.constant 0 : index
    %c0_9 = arith.constant 0 : index
    %10 = vector.load %arg8[%c0_8, %c0_9] : memref<16x128xf32, #tpu.memory_space<vmem>>, vector<16x128xf32>
    tpu.vector_store %arg8[%c0_8, %c0_9], %9 {strides = array<i32>} : memref<16x128xf32, #tpu.memory_space<vmem>>, vector<16x128xf32>,
    %c0_i32_10 = arith.constant 0 : i32
    %11 = arith.cmpi eq, %arg3, %c0_i32_10 : i32
    %12 = arith.extui %11 : i1 to i32
    %c0_i32_11 = arith.constant 0 : i32
    %13 = arith.cmpi ne, %12, %c0_i32_11 : i32
    scf.if %13 {
      %c0_12 = arith.constant 0 : index
      %c0_13 = arith.constant 0 : index
      %14 = vector.load %arg8[%c0_12, %c0_13] : memref<16x128xf32, #tpu.memory_space<vmem>>, vector<16x128xf32>
      %c0_14 = arith.constant 0 : index
      %c0_15 = arith.constant 0 : index
      %c0_16 = arith.constant 0 : index
      %15 = vector.load %arg6[%c0_14, %c0_15, %c0_16] : memref<1x1x128xf32, #tpu.memory_space<vmem>>, vector<1x1x128xf32>
      %16 = vector.shape_cast %15 : vector<1x1x128xf32> to vector<1x128xf32>
      %17 = vector.broadcast %16 : vector<1x128xf32> to vector<16x128xf32>
      %18 = arith.addf %14, %17 : vector<16x128xf32>
      %c0_17 = arith.constant 0 : index
      %c0_18 = arith.constant 0 : index
      %c0_19 = arith.constant 0 : index
      %19 = vector.load %arg7[%c0_17, %c0_18, %c0_19] : memref<1x16x128xf32, #tpu.memory_space<vmem>>, vector<1x16x128xf32>
      %20 = vector.shape_cast %19 : vector<1x16x128xf32> to vector<16x128xf32>
      %21 = vector.shape_cast %18 : vector<16x128xf32> to vector<1x16x128xf32>
      tpu.vector_store %arg7[%c0_17, %c0_18, %c0_19], %21 {strides = array<i32>} : memref<1x16x128xf32, #tpu.memory_space<vmem>>, vector<1x16x128xf32>,
    } else {
    }
    return
  }
  func.func @transform_0(%arg0: i32, %arg1: i32, %arg2: i32, %arg3: i32) -> (i32, i32, i32) {
    %c0_i32 = arith.constant 0 : i32
    %c0_i32_0 = arith.constant 0 : i32
    return %c0_i32, %arg1, %arg3 : i32, i32, i32
  }
  func.func @transform_1(%arg0: i32, %arg1: i32, %arg2: i32, %arg3: i32) -> (i32, i32, i32) {
    %c0_i32 = arith.constant 0 : i32
    return %arg0, %arg3, %arg2 : i32, i32, i32
  }
  func.func @transform_2(%arg0: i32, %arg1: i32, %arg2: i32, %arg3: i32) -> (i32, i32, i32) {
    %c0_i32 = arith.constant 0 : i32
    %c0_i32_0 = arith.constant 0 : i32
    return %arg0, %c0_i32, %arg2 : i32, i32, i32
  }
  func.func @transform_3(%arg0: i32, %arg1: i32, %arg2: i32, %arg3: i32) -> (i32, i32, i32) {
    %c0_i32 = arith.constant 0 : i32
    return %arg0, %arg1, %arg2 : i32, i32, i32
  }
}

</mosaic_0001>

<bundles_post_ra>
// kernel: tpu_custom_call.1
= control target key start
LH: loop header
LB: loop body
LE: loop exit
PB: predicated region body
PF: predicated region fallthrough
CT: control target
= control target key end

     0   :  { %8 = vsyncpa [#allocation4], 0  ;;  %s1143_s0 = inlined_call_operand.hbm [shape: f32[1,16,128], index: 0, kind: input, shape index: {}]   ;;  %s1144_s1 = inlined_call_operand.hbm [shape: f32[3,128,128], index: 1, kind: input, shape index: {}]   ;;  %s1145_s2 = inlined_call_operand.vmem [shape: f32[3,1,128], index: 2, kind: input, shape index: {}]   ;;  %s1146_s3 = inlined_call_operand.hbm [shape: f32[3,16,128], index: 3, kind: output, shape index: {}]  }
   0x1   :  { %9 = vsyncpa [#allocation7], 0 }
   0x2   :  { %11 = vsyncpa [#allocation7 + $0x1], 0 }
   0x3   :  { %12 = vsyncpa [#allocation5], 0 }
   0x4   :  { %14 = vsyncpa [#allocation5 + $0x1], 0  ;;  %s896_s12 = smov 0   ;;  %s898_s13 = smov 0  }
   0x5   :  { %s900_s14 = smov 0   ;;  %s902_s15 = smov 0  }
   0x6   :  { %s904_s16 = smov 0   ;;  %s906_s17 = smov 0  }
   0x7 LB: > { %s541_s18 = sadd.s32 4294967295, %s867_s17   ;;  %s542_s19 = sadd.s32 4294967294, %s867_s17   ;;  %s867_s17 = sphi %s906_s17, %s20_s17   ;;  %s863_s16 = sphi %s904_s16, %s1169_s16   ;;  %s859_s15 = sphi %s902_s15, %s1168_s15   ;;  %s855_s14 = sphi %s900_s14, %s1167_s14   ;;  %s851_s13 = sphi %s898_s13, %s1166_s13   ;;  %s847_s12 = sphi %s896_s12, %s1165_s12  }
   0x8   : > { %p98_p0 = scmp.ne.s32.totalorder %s851_s13, %s847_s12  ;;  %p930_p1 = scmp.eq.s32.totalorder %s541_s18, 0 }
   0x9   : > { %p934_p2 = scmp.eq.s32.totalorder %s541_s18, 2  ;;  %p160_p3 = scmp.eq.s32.totalorder %s542_s19, 2 }
   0xa   : > { %s1151_s20 = scalar_select %p930_p1, 1, 0 }
   0xb   : > { %s1152_s21 = scalar_select %p934_p2, 1, 0 }
   0xc   : > { %p940_p4 = por %p930_p1, %p98_p0  ;;  %p543_p5 = scmp.ge.s32.totalorder %s867_s17, 1 }
   0xd   : > { %p945_p6 = por %p160_p3, %p98_p0  ;;  %p167_p7 = scmp.lt.s32.totalorder %s867_s17, 4 }
   0xe   : > { %s1153_s22 = scalar_select %p940_p4, 1, 0 }
   0xf   : > { %s1154_s23 = scalar_select %p945_p6, 1, 0 }
  0x10   : > { %p950_p8 = pnand %p543_p5, %p167_p7  ;;  %s869_s25 = smov [#allocation3]  }
  0x11   : > { %s183_s26 = sshll.u32 %s869_s25, 4  ;;  %s46_s28 = sadd.s32 1, %s863_s16  ;;  %s184_s26 = int_to_ptr.vmem [resolvable:$true] %s183_s26 }
  0x12   : > { %s1155_s24 = scalar_select %p950_p8, 1, 0 }
  0x13   : > { %p654_p9 = pneg %p950_p8  ;;  %s723_s4 = scalar_lea.hbm %s1143_s0, 256 }
  0x14   : > { %p724_p11 = scmp.ne.s32.totalorder %s1143_s0, %s723_s4  ;;  %p730_p3 = scmp.lt.u32.totalorder %s723_s4, %s1143_s0 }
  0x15   : > { %p958_p10 = pnand %p654_p9, %p930_p1 }
  0x17   : > { %p725_p12 = pneg %p958_p10 }
  0x19   : > { %p726_p13 = pnand %p725_p12, %p724_p11 }
  0x1b   : > { %p727_p0 = pneg %p726_p13 }
  0x1d   : > { %p732_p5 = pnand %p730_p3, %p727_p0 }
  0x1f   : > { %735 = shalt.err (!%p732_p5)
}
  0x20   : > { %s736_s9 = scalar_lea.vmem %s184_s26, 256  ;;  %p744_p4 = scmp.lt.s32.totalorder %s184_s26, %s184_s26 }
  0x21   : > { %p737_p7 = scmp.ne.s32.totalorder %s184_s26, %s736_s9  ;;  %p745_p1 = scmp.lt.s32.totalorder %s736_s9, %s736_s9 }
  0x23   : > { %p739_p9 = pnand %p737_p7, %p725_p12  ;;  %p746_p8 = por %p745_p1, %p744_p4 }
  0x25   : > { %p740_p6 = pneg %p739_p9 }
  0x27   : > { %p747_p2 = pnand %p746_p8, %p740_p6 }
  0x29   : > { %750 = shalt.err (!%p747_p2)
}
  0x2a   : > { %s870_s10 = smov 128   ;;  %s871_s11 = smov 8  }
  0x2b   : > { %657 = dma.hbm_to_vmem [thread:$0]  (!%p958_p10), %s1143_s0, 256, %s184_s26, [#allocation4], %s870_s10, %s870_s10, %s871_s11  }
  0x2c   : > { %p48_p1 = scmp.ge.s32.totalorder %s46_s28, 3  ;;  %s85_s25 = sadd.s32 1, %s855_s14 }
  0x2d   : > { %p92_p2 = scmp.ne.s32.totalorder %s855_s14, %s851_s13  ;;  %p93_p4 = scmp.eq.s32.totalorder %s867_s17, 0 }
  0x2e   : > { %s1171_s28 = smov (%p48_p1, %s46_s28), 0  ;;  %p1158_p8 = scmp.ne.s32.totalorder %s1152_s21, 0 }
  0x2f   : > { %p988_p6 = por %p93_p4, %p92_p2  ;;  %s78_s30 = ssub.s32 %s863_s16, %s1171_s28 }
  0x30   : > { %p994_p11 = por %p1158_p8, %p92_p2  ;;  %p667_p12 = scmp.lt.s32.totalorder %s867_s17, 3 }
  0x31   : > { %p83_p10 = scmp.eq.s32.totalorder %s78_s30, 0  ;;  %s197_s26 = sand.u32 1, %s855_s14  }
  0x32   : > { %s546_s4 = sshll.u32 %s197_s26, 7  ;;  %s559_s6 = sshll.u32 %s863_s16, 11 }
  0x33   : > { %s1003_s5 = scalar_select %p83_p10, %s855_s14, %s85_s25  }
  0x34   : > { %s1009_s9 = scalar_lea.hbm %s1144_s1, %s559_s6  ;;  %s201_s21 = scalar_lea.vmem [#allocation6], %s546_s4 }
  0x35   : > { %s211_s18 = sshll.u32 %s201_s21, 4  ;;  %p1015_p13 = pnand %p667_p12, %p988_p6  ;;  %s1011_s18 = int_to_ptr.vmem [resolvable:$true] %s211_s18 }
  0x36   : > { %s1019_s25 = scalar_lea.sflag [#allocation7], %s197_s26  ;;  %s751_s30 = scalar_lea.hbm %s1009_s9, 2048 }
  0x37   : > { %p752_p0 = scmp.ne.s32.totalorder %s1009_s9, %s751_s30  ;;  %p753_p3 = pneg %p1015_p13 }
  0x38   : > { %s756_s29 = scalar_lea.hbm %s1144_s1, 6144  ;;  %p757_p9 = scmp.lt.u32.totalorder %s1009_s9, %s1144_s1 }
  0x39   : > { %p754_p5 = pnand %p753_p3, %p752_p0  ;;  %p758_p1 = scmp.lt.u32.totalorder %s756_s29, %s751_s30 }
  0x3a   : > { %p760_p4 = scmp.lt.u32.totalorder %s751_s30, %s1009_s9 }
  0x3b   : > { %p755_p7 = pneg %p754_p5  ;;  %p759_p2 = por %p758_p1, %p757_p9 }
  0x3d   : > { %p761_p6 = por %p760_p4, %p759_p2 }
  0x3f   : > { %p762_p8 = pnand %p761_p6, %p755_p7 }
  0x41   : > { %765 = shalt.err (!%p762_p8)
}
  0x42   : > { %s766_s26 = scalar_lea.vmem %s1011_s18, 2048  ;;  %s872_s21 = smov [#allocation6]  }
  0x43   : > { %p767_p12 = scmp.ne.s32.totalorder %s1011_s18, %s766_s26  ;;  %s771_s4 = sshll.u32 %s872_s21, 4  ;;  %s772_s4 = int_to_ptr.vmem [resolvable:$false] %s771_s4 }
  0x44   : > { %s773_s6 = scalar_lea.vmem %s772_s4, 4096  ;;  %p774_p5 = scmp.lt.s32.totalorder %s1011_s18, %s772_s4 }
  0x45   : > { %p769_p10 = pnand %p767_p12, %p753_p3  ;;  %p775_p9 = scmp.lt.s32.totalorder %s773_s6, %s766_s26 }
  0x47   : > { %p770_p0 = pneg %p769_p10  ;;  %p776_p1 = por %p775_p9, %p774_p5 }
  0x49   : > { %p777_p2 = pnand %p776_p1, %p770_p0 }
  0x4b   : > { %780 = shalt.err (!%p777_p2)
}
  0x4c   : > { %661 = dma.hbm_to_vmem [thread:$0]  (!%p1015_p13), %s1009_s9, 2048, %s1011_s18, %s1019_s25, %s870_s10, %s870_s10, %s871_s11  }
  0x4d   : > { %p1161_p3 = scmp.ne.s32.totalorder %s1155_s24, 0 }
  0x4e   : > { %p1162_p7 = scmp.ne.s32.totalorder (!%p1161_p3), %s1151_s20, 0 }
  0x4f   : > { %232 = sbr.rel (%p1161_p3) target bundleno = 356 (0x164), region = 32 }
  0x56   : > { %834 = dma.done.wait (%p1162_p7), [#allocation4], 256  }
  0x57   : > { %836 = vsyncadd (%p1162_p7), [#allocation4], 4294967040  ;;  %s1057_s30 = sand.u32 1, %s851_s13   ;;  %p1163_p13 = scmp.ne.s32.totalorder %s1153_s22, 0 }
  0x58   : > { %s551_s19 = sshll.u32 %s1057_s30, 7  ;;  %s239_s29 = scalar_lea.sflag [#allocation7], %s1057_s30 }
  0x59   : > { %s1061_s7 = scalar_lea.vmem [#allocation6], %s551_s19 }
  0x5a   : > { %838 = dma.done.wait (%p1163_p13), %s239_s29, 2048  }
  0x5b   : > { %840 = vsyncadd (%p1163_p13), %s239_s29, 4294965248  ;;  %v290_v0 = vld [vmem:[%s1061_s7] sm:$0xff]  ;;  %v291_v1 = vld [vmem:[%s1061_s7 + $0x8] sm:$0xff]  ;;  %p273_p4 = scmp.lt.s32.totalorder %s859_s15, 2  ;;  %s552_s20 = sshll.u32 %s1057_s30, 4 }
  0x5c   : > { %v292_v2 = vld [vmem:[%s1061_s7 + $0x10] sm:$0xff]  ;;  %v614_v3 = vpack.c.bf16 %v291_v1, %v290_v0  ;;  %v293_v4 = vld [vmem:[%s1061_s7 + $0x18] sm:$0xff]  ;;  %v294_v6 = vld [vmem:[%s1061_s7 + $0x20] sm:$0xff]  ;;  %s270_s9 = scalar_lea.vmem [#allocation8], %s552_s20  ;;  %s560_s25 = sshll.u32 %s859_s15, 8 }
  0x5d   : > { %v618_v5 = vpack.c.bf16 %v293_v4, %v292_v2  ;;  %v295_v7 = vld [vmem:[%s1061_s7 + $0x28] sm:$0xff]  ;;  %v288_v9 = vld [vmem:[#allocation3] sm:$0xff]  ;;  %v297_v11 = vld [vmem:[%s1061_s7 + $0x38] sm:$0xff]  ;;  %s274_s22 = scalar_select %p273_p4, %s859_s15, 2 }
  0x5e   : > { %615 = vmatprep.subr.bf16.mxu0 %v614_v3  ;;  %v622_v8 = vpack.c.bf16 %v295_v7, %v294_v6  ;;  %v296_v10 = vld [vmem:[%s1061_s7 + $0x30] sm:$0xff]  ;;  %611 = vmatprep.mubr.f32.mxu0 %v288_v9  ;;  %v298_v13 = vld [vmem:[%s1061_s7 + $0x40] sm:$0xff]  ;;  %v299_v14 = vld [vmem:[%s1061_s7 + $0x48] sm:$0xff]  ;;  %s418_s18 = sshll.u32 %s270_s9, 4  ;;  %s1095_s21 = scalar_lea.hbm %s1146_s3, %s560_s25  ;;  %s1090_s18 = int_to_ptr.vmem [resolvable:$true] %s418_s18 }
  0x5f   : > { %617 = vmatpush3.bf16.msra.mxu0 %v614_v3  ;;  %v626_v12 = vpack.c.bf16 %v297_v11, %v296_v10  ;;  %v630_v15 = vpack.c.bf16 %v299_v14, %v298_v13  ;;  %v300_v16 = vld [vmem:[%s1061_s7 + $0x50] sm:$0xff]  ;;  %v301_v17 = vld [vmem:[%s1061_s7 + $0x58] sm:$0xff]  ;;  %v302_v19 = vld [vmem:[%s1061_s7 + $0x60] sm:$0xff]  ;;  %s278_s11 = scalar_lea.vmem %s1145_s2, %s274_s22  ;;  %s402_s4 = scalar_lea.sflag [#allocation5], %s1057_s30 }
  0x60   : > { %619 = vmatprep.subr.bf16.mxu0 %v618_v5  ;;  %v634_v18 = vpack.c.bf16 %v301_v17, %v300_v16  ;;  %v303_v20 = vld [vmem:[%s1061_s7 + $0x68] sm:$0xff]  ;;  %v304_v22 = vld [vmem:[%s1061_s7 + $0x70] sm:$0xff]  ;;  %v305_v23 = vld [vmem:[%s1061_s7 + $0x78] sm:$0xff]  ;;  %s781_s6 = scalar_lea.vmem %s1090_s18, 256  ;;  %s873_s15 = smov [#allocation8]  }
  0x61   : > { %v638_v21 = vpack.c.bf16 %v303_v20, %v302_v19  ;;  %v642_v24 = vpack.c.bf16 %v305_v23, %v304_v22  ;;  %v289_v25 = vld [vmem:[#allocation3 + $0x8] sm:$0xff]  ;;  %v553_v26 = vld [vmem:[%s278_s11] ss:$0 sm:$0xff]  ;;  %p782_p6 = scmp.ne.s32.totalorder %s1090_s18, %s781_s6  ;;  %s785_s19 = sshll.u32 %s873_s15, 4  ;;  %s786_s19 = int_to_ptr.vmem [resolvable:$false] %s785_s19 }
  0x62   : > { %s787_s29 = scalar_lea.vmem %s786_s19, 512  ;;  %p788_p10 = scmp.lt.s32.totalorder %s1090_s18, %s786_s19 }
  0x63   : > { %621 = vmatpush3.bf16.msra.mxu0 %v618_v5  ;;  %p783_p8 = pnand %p782_p6, %p994_p11  ;;  %p789_p0 = scmp.lt.s32.totalorder %s787_s29, %s781_s6 }
  0x64   : > { %623 = vmatprep.subr.bf16.mxu0 %v622_v8 }
  0x65   : > { %p784_p12 = pneg %p783_p8  ;;  %p790_p5 = por %p789_p0, %p788_p10 }
  0x67   : > { %625 = vmatpush3.bf16.msra.mxu0 %v622_v8  ;;  %p791_p9 = pnand %p790_p5, %p784_p12 }
  0x68   : > { %627 = vmatprep.subr.bf16.mxu0 %v626_v12 }
  0x6b   : > { %629 = vmatpush3.bf16.msra.mxu0 %v626_v12 }
  0x6c   : > { %631 = vmatprep.subr.bf16.mxu0 %v630_v15 }
  0x6f   : > { %633 = vmatpush3.bf16.msra.mxu0 %v630_v15 }
  0x70   : > { %635 = vmatprep.subr.bf16.mxu0 %v634_v18 }
  0x73   : > { %637 = vmatpush3.bf16.msra.mxu0 %v634_v18 }
  0x74   : > { %639 = vmatprep.subr.bf16.mxu0 %v638_v21 }
  0x77   : > { %641 = vmatpush3.bf16.msra.mxu0 %v638_v21 }
  0x78   : > { %643 = vmatprep.subr.bf16.mxu0 %v642_v24 }
  0x7b   : > { %645 = vmatpush3.bf16.msra.mxu0 %v642_v24 }
  0x7e   : > { %612 = vmatmul.mubr.f32.vlgmr.msra.gmra.mrb[0].mxu0 %v289_v25 }
 0x151   : > { %v613_v27 = vpop.f32.mrb[0].mxu0 }
 0x152   : > { %v398_v28 = vadd.f32 %v613_v27, %v553_v26  ;;  %v372_v29 = vpop.f32.mrb[1].mxu0 }
 0x153   : > { %v397_v30 = vadd.f32 %v553_v26, %v372_v29 }
 0x154   : > { %400 = vst [vmem:[%s270_s9 + $0x8] sm:$0xff] %v398_v28 }
 0x155   : > { %399 = vst [vmem:[%s270_s9] sm:$0xff] %v397_v30 }
 0x156   : > { %794 = shalt.err (!%p791_p9)
}
 0x157   : > { %s795_s7 = scalar_lea.hbm %s1095_s21, 256  ;;  %s799_s24 = scalar_lea.hbm %s1146_s3, 768 }
 0x158   : > { %p796_p1 = scmp.ne.s32.totalorder %s1095_s21, %s795_s7  ;;  %p800_p7 = scmp.lt.u32.totalorder %s1095_s21, %s1146_s3 }
 0x159   : > { %p801_p13 = scmp.lt.u32.totalorder %s799_s24, %s795_s7  ;;  %p803_p6 = scmp.lt.u32.totalorder %s795_s7, %s1095_s21 }
 0x15a   : > { %p797_p2 = pnand %p796_p1, %p994_p11 }
 0x15b   : > { %p802_p4 = por %p801_p13, %p800_p7 }
 0x15c   : > { %p798_p3 = pneg %p797_p2 }
 0x15d   : > { %p804_p8 = por %p803_p6, %p802_p4 }
 0x15f   : > { %p805_p12 = pnand %p804_p8, %p798_p3 }
 0x161   : > { %808 = shalt.err (!%p805_p12)
}
 0x162   : > { %s874_s9 = smov 128   ;;  %s875_s25 = smov 8  }
 0x163   : > { %652 = dma.vmem_to_hbm [thread:$0]  (%p994_p11), %s1090_s18, 256, %s1095_s21, %s402_s4, %s874_s9, %s874_s9, %s875_s25  }
 0x164 PF: > { %p669_p10 = scmp.ge.s32.totalorder %s867_s17, 2  ;;  %s433_s8 = sand.u32 1, %s847_s12  }
 0x165   : > { %p1164_p0 = scmp.ne.s32.totalorder %s1154_s23, 0  ;;  %s434_s26 = scalar_lea.sflag [#allocation5], %s433_s8 }
 0x167   : > { %p663_p5 = pnand %p669_p10, %p1164_p0 }
 0x169   : > { %842 = dma.done.wait (!%p663_p5), %s434_s26, 256  }
 0x16a   : > { %844 = vsyncadd (!%p663_p5), %s434_s26, 4294967040  ;;  %s20_s17 = sadd.s32 1, %s867_s17   ;;  %s1165_s12 = smov %s851_s13 }
 0x16b   : > { %p17_p9 = scmp.ge.s32.totalorder %s20_s17, 5   ;;  %s1166_s13 = smov %s855_s14 }
 0x16c   : > { %s1167_s14 = smov %s1003_s5  ;;  %s1168_s15 = smov %s863_s16 }
 0x16d   : > { %s1169_s16 = smov %s1171_s28  ;;  %19 = sbr.rel (!%p17_p9) target bundleno = 7 (0x7), region = 94 }
 0x174   :  { %439 = vsyncpa [#allocation4], 1 }
 0x175   :  { %441 = vsyncpa [#allocation4 + $0x1], 1 }
 0x176   :  { %442 = vsyncpa [#allocation7], 1 }
 0x177   :  { %444 = vsyncpa [#allocation7 + $0x1], 1 }
 0x178   :  { %445 = vsyncpa [#allocation5], 1 }
 0x179   :  { %447 = vsyncpa [#allocation5 + $0x1], 1 }

</bundles_post_ra>
